<compile_context>
chip_gen: v6e
topology: v6e:2x2x1
jax: 0.10.0
libtpu: 0.0.40
codegen_flags: <defaults>
</compile_context>

<pallas_src>
import jax
import jax.numpy as jnp
from jax.experimental import pallas as pl
from jax.experimental.pallas import tpu as pltpu

_H_REP = 2
_W_REP = 2


def _sublane_pack(dtype):
    # Packed-sublane granularity: 32-bit -> 8, 16-bit -> 16, 8-bit -> 32.
    itemsize = jnp.dtype(dtype).itemsize
    return max(8, 8 * (4 // max(1, itemsize)))


def _vmem_budget_and_cap():
    """(tile budget for our double-buffered tiles, physical VMEM capacity)."""
    cap = 64 * 1024 * 1024  # conservative default = v7x per-TC physical VMEM
    try:
        cap = int(pltpu.get_tpu_info().vmem_capacity_bytes)
    except Exception:
        pass
    # Leave headroom: never plan for more than half of physical, cap at 32 MiB.
    budget = min(cap // 2, 32 * 1024 * 1024)
    return budget, cap


def _compiler_params(dimension_semantics, vmem_limit_bytes):
    cls = getattr(pltpu, "CompilerParams", None)
    if cls is None:  # very old jax releases
        cls = getattr(pltpu, "TPUCompilerParams")
    try:
        return cls(dimension_semantics=dimension_semantics,
                   vmem_limit_bytes=int(vmem_limit_bytes))
    except TypeError:
        return cls(dimension_semantics=dimension_semantics)


# ---------------------------------------------------------------------------
# Kernels
# ---------------------------------------------------------------------------
def _repeat2x2_full_kernel(x_ref, o_ref):
    # x: (nc, H, W) resident tile; o: (nc, 2H, 2W) contiguous output block.
    # Four unmasked, lane/sublane-aligned full-tile stores (H % sublane_pack
    # and W % 128 guaranteed by the caller's gate).
    x = x_ref[...]
    _, h, w = x.shape
    o_ref[:, :h, :w] = x
    o_ref[:, :h, w:] = x
    o_ref[:, h:, :w] = x
    o_ref[:, h:, w:] = x


def _repeat2x_w_kernel(x_ref, o_ref):
    # x: (1, h_block, W); o: (1, h_block, 2W).  W-doubling folded into the
    # block (two lane-aligned stores); H-doubling handled by the grid.
    x = x_ref[...]
    w = x.shape[-1]
    o_ref[:, :, :w] = x
    o_ref[:, :, w:] = x


# ---------------------------------------------------------------------------
# pallas_call wrappers
# ---------------------------------------------------------------------------
def _pallas_repeat_full(x3, nc_block, vmem_limit):
    """Fully-folded path: grid over NC only, output block (nc, 2H, 2W)."""
    NC, H, W = x3.shape
    return pl.pallas_call(
        _repeat2x2_full_kernel,
        out_shape=jax.ShapeDtypeStruct((NC, _H_REP * H, _W_REP * W), x3.dtype),
        grid=(pl.cdiv(NC, nc_block),),
        in_specs=[pl.BlockSpec((nc_block, H, W), lambda n: (n, 0, 0))],
        out_specs=pl.BlockSpec((nc_block, _H_REP * H, _W_REP * W),
                               lambda n: (n, 0, 0)),
        compiler_params=_compiler_params(("parallel",), vmem_limit),
    )(x3)


def _pallas_repeat_htiled(x3, h_block, r_sem, vmem_limit):
    """H-tiled path for large spatial shapes.  Requires H % h_block == 0."""
    NC, H, W = x3.shape
    nh = H // h_block

    def out_idx(n, h, r):
        # First H copy occupies output row-blocks [0, nh), second copy [nh, 2nh).
        return (n, r * nh + h, 0)

    return pl.pallas_call(
        _repeat2x_w_kernel,
        out_shape=jax.ShapeDtypeStruct((NC, _H_REP * H, _W_REP * W), x3.dtype),
        grid=(NC, nh, _H_REP),
        in_specs=[
            # Input block independent of r -> stays resident across both H
            # copies (one HBM read, two contiguous writes) when r is last.
            pl.BlockSpec((1, h_block, W), lambda n, h, r: (n, h, 0)),
        ],
        out_specs=pl.BlockSpec((1, h_block, _W_REP * W), out_idx),
        compiler_params=_compiler_params(("parallel", "parallel", r_sem),
                                         vmem_limit),
    )(x3)


# ---------------------------------------------------------------------------
# Public wrapper
# ---------------------------------------------------------------------------
def repeat_twice_hw(x, *, min_out_bytes=2 * 1024 * 1024, force_pallas=False):
    """JAX equivalent of torch.Tensor.repeat(1, 1, 2, 2) on NCHW input."""
    N, C, H, W = x.shape
    itemsize = jnp.dtype(x.dtype).itemsize
    out_bytes = N * C * _H_REP * H * _W_REP * W * itemsize

    sub = _sublane_pack(x.dtype)
    lane_dense = (W % 128 == 0) and (H % sub == 0)
    if (not lane_dense) or (out_bytes < min_out_bytes and not force_pallas):
        # Tiny or lane/sublane-sparse case: a fused XLA broadcast beats any
        # kernel (fixed pallas_call + per-step pipeline overhead dominates).
        return jnp.tile(x, (1, 1, _H_REP, _W_REP))

    NC = N * C
    x3 = x.reshape(NC, H, W)  # contiguous -> free reshape

    budget, cap = _vmem_budget_and_cap()
    bytes_per_row = H * W * itemsize  # input bytes per NC index

    if 10 * bytes_per_row <= budget:
        # Fully-folded path.  Footprint ~ 10 * T_in (see header comment).
        nc_block = max(1, min(NC, budget // (10 * bytes_per_row)))
        if NC >= 2:
            # Ensure >= 2 grid steps so the "parallel" NC axis can shard
            # across both TensorCores on v7x (negligible cost on v5e/v6e).
            nc_block = min(nc_block, -(-NC // 2))
        footprint = 10 * nc_block * bytes_per_row
        vmem_limit = min(cap, max(footprint + (8 << 20), 32 << 20))
        out3 = _pallas_repeat_full(x3, int(nc_block), vmem_limit)
    else:
        # H-tiled path.  Footprint ~ 6 * T_in with T_in = h_block*W*itemsize.
        max_hb = budget // (6 * W * itemsize)
        hb = (max_hb // sub) * sub
        h_block = 0
        while hb >= sub:
            if H % hb == 0:  # must divide H so output row-blocks don't straddle copies
                h_block = hb
                break
            hb -= sub
        if h_block == 0:
            # TODO(synk): no sublane-aligned divisor of H fits VMEM; XLA fallback.
            return jnp.tile(x, (1, 1, _H_REP, _W_REP))
        nh = H // h_block
        # If only the replication axis has >1 entries, make it "parallel" so
        # v7x's second TensorCore gets work; otherwise keep it "arbitrary" so
        # the input tile stays resident across both H copies.
        r_sem = "parallel" if (NC * nh) < 2 else "arbitrary"
        footprint = 6 * h_block * W * itemsize
        vmem_limit = min(cap, max(footprint + (8 << 20), 32 << 20))
        out3 = _pallas_repeat_htiled(x3, int(h_block), r_sem, vmem_limit)

    return out3.reshape(N, C, _H_REP * H, _W_REP * W)


if __name__ == "__main__":
    key = jax.random.PRNGKey(0)

    # 1) Lane-dense f32 shape exercising the fully-folded Pallas path:
    #    NCHW (2, 4, 16, 128) -> (2, 4, 32, 256).
    x = jax.random.normal(key, (2, 4, 16, 128), dtype=jnp.float32)
    out = jax.block_until_ready(repeat_twice_hw(x, force_pallas=True))
    ref = jnp.tile(x, (1, 1, 2, 2))
    assert out.shape == (2, 4, 32, 256), out.shape
    assert out.dtype == x.dtype
    assert jnp.array_equal(out, ref), "folded Pallas path mismatch vs jnp.tile"

    # 2) bf16 (packed sublanes, pack=16) through the same Pallas path.
    xb = x.astype(jnp.bfloat16)
    outb = jax.block_until_ready(repeat_twice_hw(xb, force_pallas=True))
    assert jnp.array_equal(outb, jnp.tile(xb, (1, 1, 2, 2))), "bf16 mismatch"

    # 3) Directly exercise the H-tiled variant (used for large spatial shapes)
    #    on a small shape so it is covered by this run.
    x3 = jax.random.normal(jax.random.PRNGKey(2), (4, 16, 128), dtype=jnp.float32)
    out3 = jax.block_until_ready(
        _pallas_repeat_htiled(x3, h_block=8, r_sem="arbitrary",
                              vmem_limit=32 << 20))
    assert jnp.array_equal(out3, jnp.tile(x3, (1, 2, 2))), "H-tiled mismatch"

    # 4) Module's original tiny example (1, 2, 3, 3): XLA fallback path.
    xs = jax.random.normal(jax.random.PRNGKey(1), (1, 2, 3, 3), dtype=jnp.float32)
    outs = jax.block_until_ready(repeat_twice_hw(xs))
    assert outs.shape == (1, 2, 6, 6), outs.shape
    assert jnp.array_equal(outs, jnp.tile(xs, (1, 1, 2, 2))), "fallback mismatch"

    print("KERNEL_OK")
</pallas_src>

<mosaic_0001>
module attributes {stable_mosaic.version = 11 : i64} {
  func.func @_repeat2x2_full_kernel(%arg0: i32, %arg1: memref<4x16x128xf32, #tpu.memory_space<vmem>>, %arg2: memref<4x32x256xf32, #tpu.memory_space<vmem>>) attributes {dimension_semantics = [#tpu.dimension_semantics<parallel>], iteration_bounds = array<i64: 2>, scalar_prefetch = 0 : i64, scratch_operands = 0 : i64, tpu.core_type = #tpu.core_type<tc>, window_params = [{transform_indices = @transform_0, window_bounds = array<i64: 4, 16, 128>}, {transform_indices = @transform_1, window_bounds = array<i64: 4, 32, 256>}]} {
    %c0 = arith.constant 0 : index
    %c0_0 = arith.constant 0 : index
    %c0_1 = arith.constant 0 : index
    %0 = vector.load %arg1[%c0, %c0_0, %c0_1] : memref<4x16x128xf32, #tpu.memory_space<vmem>>, vector<4x16x128xf32>
    %c0_2 = arith.constant 0 : index
    %c0_3 = arith.constant 0 : index
    %c0_4 = arith.constant 0 : index
    %1 = vector.load %arg2[%c0_2, %c0_3, %c0_4] : memref<4x32x256xf32, #tpu.memory_space<vmem>>, vector<4x16x128xf32>
    tpu.vector_store %arg2[%c0_2, %c0_3, %c0_4], %0 {strides = array<i32>} : memref<4x32x256xf32, #tpu.memory_space<vmem>>, vector<4x16x128xf32>,
    %c0_5 = arith.constant 0 : index
    %c0_6 = arith.constant 0 : index
    %c128 = arith.constant 128 : index
    %2 = vector.load %arg2[%c0_5, %c0_6, %c128] : memref<4x32x256xf32, #tpu.memory_space<vmem>>, vector<4x16x128xf32>
    tpu.vector_store %arg2[%c0_5, %c0_6, %c128], %0 {strides = array<i32>} : memref<4x32x256xf32, #tpu.memory_space<vmem>>, vector<4x16x128xf32>,
    %c0_7 = arith.constant 0 : index
    %c16 = arith.constant 16 : index
    %c0_8 = arith.constant 0 : index
    %3 = vector.load %arg2[%c0_7, %c16, %c0_8] : memref<4x32x256xf32, #tpu.memory_space<vmem>>, vector<4x16x128xf32>
    tpu.vector_store %arg2[%c0_7, %c16, %c0_8], %0 {strides = array<i32>} : memref<4x32x256xf32, #tpu.memory_space<vmem>>, vector<4x16x128xf32>,
    %c0_9 = arith.constant 0 : index
    %c16_10 = arith.constant 16 : index
    %c128_11 = arith.constant 128 : index
    %4 = vector.load %arg2[%c0_9, %c16_10, %c128_11] : memref<4x32x256xf32, #tpu.memory_space<vmem>>, vector<4x16x128xf32>
    tpu.vector_store %arg2[%c0_9, %c16_10, %c128_11], %0 {strides = array<i32>} : memref<4x32x256xf32, #tpu.memory_space<vmem>>, vector<4x16x128xf32>,
    return
  }
  func.func @transform_0(%arg0: i32) -> (i32, i32, i32) {
    %c0_i32 = arith.constant 0 : i32
    %c0_i32_0 = arith.constant 0 : i32
    %c0_i32_1 = arith.constant 0 : i32
    return %arg0, %c0_i32, %c0_i32_0 : i32, i32, i32
  }
  func.func @transform_1(%arg0: i32) -> (i32, i32, i32) {
    %c0_i32 = arith.constant 0 : i32
    %c0_i32_0 = arith.constant 0 : i32
    %c0_i32_1 = arith.constant 0 : i32
    return %arg0, %c0_i32, %c0_i32_0 : i32, i32, i32
  }
}

</mosaic_0001>

<bundles_post_ra>
// kernel: tpu_custom_call.1
= control target key start
LH: loop header
LB: loop body
LE: loop exit
PB: predicated region body
PF: predicated region fallthrough
CT: control target
= control target key end

     0   :  { %6 = vsyncpa [#allocation3], 0  ;;  %s646_s0 = inlined_call_operand.hbm [shape: f32[8,16,128], index: 0, kind: input, shape index: {}]   ;;  %s647_s1 = inlined_call_operand.hbm [shape: f32[8,32,256], index: 1, kind: output, shape index: {}]  }
   0x1   :  { %8 = vsyncpa [#allocation3 + $0x1], 0 }
   0x2   :  { %9 = vsyncpa [#allocation4], 0 }
   0x3   :  { %11 = vsyncpa [#allocation4 + $0x1], 0  ;;  %s446_s6 = smov 0   ;;  %s448_s7 = smov 0  }
   0x4   :  { %s450_s8 = smov 0   ;;  %s452_s9 = smov 0  }
   0x5 LB: > { %s467_s10 = sadd.s32 4294967295, %s428_s9   ;;  %s266_s11 = sadd.s32 4294967294, %s428_s9   ;;  %s428_s9 = sphi %s452_s9, %s662_s9   ;;  %s424_s8 = sphi %s450_s8, %s661_s8   ;;  %s420_s7 = sphi %s448_s7, %s660_s7   ;;  %s416_s6 = sphi %s446_s6, %s659_s6  }
   0x6   : > { %s471_s12 = sadd.s32 1, %s428_s9   ;;  %s24_s13 = sadd.s32 1, %s424_s8 }
   0x7   : > { %s21_s14 = ssub.s32 %s428_s9, %s471_s12  ;;  %p31_p0 = scmp.ne.s32.totalorder %s424_s8, %s420_s7 }
   0x8   : > { %p22_p1 = scmp.eq.s32.totalorder %s21_s14, 0  ;;  %p32_p2 = scmp.eq.s32.totalorder %s428_s9, 0 }
   0x9   : > { %p37_p3 = scmp.ne.s32.totalorder %s420_s7, %s416_s6  ;;  %p38_p4 = scmp.eq.s32.totalorder %s467_s10, 0 }
   0xa   : > { %s483_s15 = scalar_select %p22_p1, %s424_s8, %s24_s13  }
   0xb   : > { %p485_p5 = por %p32_p2, %p31_p0  ;;  %p489_p6 = por %p38_p4, %p37_p3 }
   0xc   : > { %p61_p7 = scmp.eq.s32.totalorder %s467_s10, 1  ;;  %p67_p8 = scmp.eq.s32.totalorder %s266_s11, 1 }
   0xd   : > { %s651_s17 = scalar_select %p489_p6, 1, 0 }
   0xe   : > { %p298_p10 = scmp.lt.s32.totalorder %s428_s9, 2  ;;  %p496_p11 = por %p61_p7, %p31_p0 }
   0xf   : > { %p500_p12 = por %p67_p8, %p37_p3  ;;  %s87_s20 = sand.u32 1, %s424_s8  }
  0x10   : > { %s652_s18 = scalar_select %p496_p11, 1, 0 }
  0x11   : > { %s653_s19 = scalar_select %p500_p12, 1, 0 }
  0x12   : > { %s283_s21 = sshll.u32 %s428_s9, 10  ;;  %s269_s22 = sshll.u32 %s87_s20, 6 }
  0x13   : > { %s509_s25 = scalar_lea.hbm %s646_s0, %s283_s21  ;;  %s91_s26 = scalar_lea.vmem [#allocation2], %s269_s22 }
  0x14   : > { %s99_s27 = sshll.u32 %s91_s26, 4  ;;  %p513_p13 = pnand %p298_p10, %p485_p5  ;;  %s517_s27 = int_to_ptr.vmem [resolvable:$true] %s99_s27 }
  0x15   : > { %s519_s29 = scalar_lea.sflag [#allocation3], %s87_s20  ;;  %s336_s30 = scalar_lea.hbm %s509_s25, 1024 }
  0x16   : > { %p337_p0 = scmp.ne.s32.totalorder %s509_s25, %s336_s30  ;;  %p338_p1 = pneg %p513_p13 }
  0x17   : > { %s341_s4 = scalar_lea.hbm %s646_s0, 2048  ;;  %p342_p4 = scmp.lt.s32.totalorder %s509_s25, %s646_s0 }
  0x18   : > { %p339_p2 = pnand %p338_p1, %p337_p0  ;;  %p343_p5 = scmp.lt.s32.totalorder %s341_s4, %s336_s30 }
  0x1a   : > { %p340_p3 = pneg %p339_p2  ;;  %p344_p7 = por %p343_p5, %p342_p4 }
  0x1c   : > { %p345_p8 = pnand %p344_p7, %p340_p3 }
  0x1e   : > { %348 = shalt.err (!%p345_p8)
}
  0x1f   : > { %s349_s13 = scalar_lea.vmem %s517_s27, 1024  ;;  %s430_s14 = smov [#allocation2]  }
  0x20   : > { %p350_p10 = scmp.ne.s32.totalorder %s517_s27, %s349_s13  ;;  %s354_s16 = sshll.u32 %s430_s14, 4  ;;  %s355_s16 = int_to_ptr.vmem [resolvable:$false] %s354_s16 }
  0x21   : > { %s356_s20 = scalar_lea.vmem %s355_s16, 2048  ;;  %p357_p2 = scmp.lt.s32.totalorder %s517_s27, %s355_s16 }
  0x22   : > { %p352_p9 = pnand %p350_p10, %p338_p1  ;;  %p358_p12 = scmp.lt.s32.totalorder %s356_s20, %s349_s13 }
  0x24   : > { %p353_p0 = pneg %p352_p9  ;;  %p359_p11 = por %p358_p12, %p357_p2 }
  0x26   : > { %p360_p6 = pnand %p359_p11, %p353_p0 }
  0x28   : > { %363 = shalt.err (!%p360_p6)
}
  0x29   : > { %s431_s21 = smov 128   ;;  %s432_s22 = smov 8  }
  0x2a   : > { %293 = dma.hbm_to_vmem [thread:$0]  (!%p513_p13), %s509_s25, 1024, %s517_s27, %s519_s29, %s431_s21, %s431_s21, %s432_s22  }
  0x2b   : > { %p273_p9 = scmp.ge.s32.totalorder %s428_s9, 1  ;;  %p107_p1 = scmp.lt.s32.totalorder %s428_s9, 3 }
  0x2d   : > { %p108_p3 = pnand %p273_p9, %p107_p1 }
  0x2e   : > { %s543_s23 = sand.u32 (!%p108_p3), 1, %s420_s7   ;;  %p655_p6 = scmp.ne.s32.totalorder (!%p108_p3), %s651_s17, 0 }
  0x2f   : > { %111 = sbr.rel (%p108_p3) target bundleno = 84 (0x54), region = 24  ;;  %s274_s24 = sshll.u32 (!%p108_p3), %s543_s23, 6 }
  0x30   : > { %s114_s26 = scalar_lea.sflag (!%p108_p3), [#allocation3], %s543_s23  ;;  %s547_s30 = scalar_lea.vmem (!%p108_p3), [#allocation2], %s274_s24 }
  0x34   : > { %407 = dma.done.wait (%p655_p6), %s114_s26, 1024  }
  0x35   : > { %409 = vsyncadd (%p655_p6), %s114_s26, 4294966272  ;;  %s275_s25 = sshll.u32 %s543_s23, 8  ;;  %s285_s27 = sshll.u32 %s467_s10, 12  ;;  %v138_v0 = vld [vmem:[%s547_s30] sm:$0xff]  ;;  %v139_v1 = vld [vmem:[%s547_s30 + $0x8] sm:$0xff] }
  0x36   : > { %s555_s28 = scalar_lea.vmem [#allocation5], %s275_s25  ;;  %v140_v2 = vld [vmem:[%s547_s30 + $0x10] sm:$0xff]  ;;  %s564_s2 = scalar_lea.hbm %s647_s1, %s285_s27  ;;  %v141_v3 = vld [vmem:[%s547_s30 + $0x18] sm:$0xff]  ;;  %v142_v4 = vld [vmem:[%s547_s30 + $0x20] sm:$0xff] }
  0x37   : > { %s193_s17 = sshll.u32 %s555_s28, 4  ;;  %146 = vst [vmem:[%s555_s28] sm:$0xff] %v138_v0  ;;  %154 = vst [vmem:[%s555_s28 + $0x8] sm:$0xff] %v138_v0  ;;  %v143_v5 = vld [vmem:[%s547_s30 + $0x28] sm:$0xff]  ;;  %v144_v6 = vld [vmem:[%s547_s30 + $0x30] sm:$0xff]  ;;  %s179_s3 = scalar_lea.sflag [#allocation4], %s543_s23  ;;  %s566_s17 = int_to_ptr.vmem [resolvable:$true] %s193_s17 }
  0x38   : > { %162 = vst [vmem:[%s555_s28 + $0x20] sm:$0xff] %v138_v0  ;;  %170 = vst [vmem:[%s555_s28 + $0x28] sm:$0xff] %v138_v0  ;;  %v145_v7 = vld [vmem:[%s547_s30 + $0x38] sm:$0xff]  ;;  %s364_s4 = scalar_lea.vmem %s566_s17, 4096  ;;  %p656_p12 = scmp.ne.s32.totalorder %s652_s18, 0 }
  0x39   : > { %147 = vst [vmem:[%s555_s28 + $0x10] sm:$0xff] %v139_v1  ;;  %155 = vst [vmem:[%s555_s28 + $0x18] sm:$0xff] %v139_v1  ;;  %p365_p11 = scmp.ne.s32.totalorder %s566_s17, %s364_s4  ;;  %s433_s5 = smov [#allocation5]  }
  0x3a   : > { %163 = vst [vmem:[%s555_s28 + $0x30] sm:$0xff] %v139_v1  ;;  %171 = vst [vmem:[%s555_s28 + $0x38] sm:$0xff] %v139_v1  ;;  %s368_s11 = sshll.u32 %s433_s5, 4  ;;  %s369_s11 = int_to_ptr.vmem [resolvable:$false] %s368_s11 }
  0x3b   : > { %148 = vst [vmem:[%s555_s28 + $0x40] sm:$0xff] %v140_v2  ;;  %156 = vst [vmem:[%s555_s28 + $0x48] sm:$0xff] %v140_v2  ;;  %p366_p13 = pnand %p365_p11, %p656_p12  ;;  %s370_s13 = scalar_lea.vmem %s369_s11, 8192 }
  0x3c   : > { %164 = vst [vmem:[%s555_s28 + $0x60] sm:$0xff] %v140_v2  ;;  %172 = vst [vmem:[%s555_s28 + $0x68] sm:$0xff] %v140_v2  ;;  %p371_p5 = scmp.lt.s32.totalorder %s566_s17, %s369_s11  ;;  %p372_p7 = scmp.lt.s32.totalorder %s370_s13, %s364_s4 }
  0x3d   : > { %149 = vst [vmem:[%s555_s28 + $0x50] sm:$0xff] %v141_v3  ;;  %157 = vst [vmem:[%s555_s28 + $0x58] sm:$0xff] %v141_v3  ;;  %p367_p4 = pneg %p366_p13 }
  0x3e   : > { %165 = vst [vmem:[%s555_s28 + $0x70] sm:$0xff] %v141_v3  ;;  %173 = vst [vmem:[%s555_s28 + $0x78] sm:$0xff] %v141_v3  ;;  %p373_p8 = por %p372_p7, %p371_p5 }
  0x3f   : > { %150 = vst [vmem:[%s555_s28 + $0x80] sm:$0xff] %v142_v4  ;;  %158 = vst [vmem:[%s555_s28 + $0x88] sm:$0xff] %v142_v4 }
  0x40   : > { %166 = vst [vmem:[%s555_s28 + $0xa0] sm:$0xff] %v142_v4  ;;  %174 = vst [vmem:[%s555_s28 + $0xa8] sm:$0xff] %v142_v4  ;;  %p374_p10 = pnand %p373_p8, %p367_p4 }
  0x41   : > { %151 = vst [vmem:[%s555_s28 + $0x90] sm:$0xff] %v143_v5  ;;  %159 = vst [vmem:[%s555_s28 + $0x98] sm:$0xff] %v143_v5 }
  0x42   : > { %167 = vst [vmem:[%s555_s28 + $0xb0] sm:$0xff] %v143_v5  ;;  %175 = vst [vmem:[%s555_s28 + $0xb8] sm:$0xff] %v143_v5 }
  0x43   : > { %152 = vst [vmem:[%s555_s28 + $0xc0] sm:$0xff] %v144_v6  ;;  %160 = vst [vmem:[%s555_s28 + $0xc8] sm:$0xff] %v144_v6 }
  0x44   : > { %168 = vst [vmem:[%s555_s28 + $0xe0] sm:$0xff] %v144_v6  ;;  %176 = vst [vmem:[%s555_s28 + $0xe8] sm:$0xff] %v144_v6 }
  0x45   : > { %153 = vst [vmem:[%s555_s28 + $0xd0] sm:$0xff] %v145_v7  ;;  %161 = vst [vmem:[%s555_s28 + $0xd8] sm:$0xff] %v145_v7 }
  0x46   : > { %169 = vst [vmem:[%s555_s28 + $0xf0] sm:$0xff] %v145_v7  ;;  %177 = vst [vmem:[%s555_s28 + $0xf8] sm:$0xff] %v145_v7 }
  0x47   : > { %377 = shalt.err (!%p374_p10)
}
  0x48   : > { %s378_s14 = scalar_lea.hbm %s564_s2, 4096  ;;  %s382_s21 = scalar_lea.hbm %s647_s1, 8192 }
  0x49   : > { %p379_p0 = scmp.ne.s32.totalorder %s564_s2, %s378_s14  ;;  %p383_p1 = scmp.lt.s32.totalorder %s564_s2, %s647_s1 }
  0x4a   : > { %p384_p3 = scmp.lt.s32.totalorder %s382_s21, %s378_s14 }
  0x4b   : > { %p380_p2 = pnand %p379_p0, %p656_p12 }
  0x4c   : > { %p385_p6 = por %p384_p3, %p383_p1 }
  0x4d   : > { %p381_p9 = pneg %p380_p2 }
  0x4f   : > { %p386_p11 = pnand %p385_p6, %p381_p9 }
  0x51   : > { %389 = shalt.err (!%p386_p11)
}
  0x52   : > { %s434_s26 = smov 256   ;;  %s435_s30 = smov 16  }
  0x53   : > { %288 = dma.vmem_to_hbm [thread:$0]  (%p656_p12), %s566_s17, 4096, %s564_s2, %s179_s3, %s434_s26, %s434_s26, %s435_s30  }
  0x54 PF: > { %s208_s25 = sand.u32 1, %s416_s6   ;;  %p657_p13 = scmp.ne.s32.totalorder %s653_s19, 0 }
  0x55   : > { %p658_p4 = scmp.ge.s32.totalorder %s428_s9, 2  ;;  %s209_s27 = scalar_lea.sflag [#allocation4], %s208_s25 }
  0x57   : > { %p295_p5 = pnand %p658_p4, %p657_p13 }
  0x59   : > { %p296_p7 = pneg %p295_p5 }
  0x5b   : > { %411 = dma.done.wait (%p296_p7), %s209_s27, 4096  }
  0x5c   : > { %413 = vsyncadd (%p296_p7), %s209_s27, 4294963200  ;;  %p14_p8 = scmp.ge.s32.totalorder %s471_s12, 4   ;;  %s659_s6 = smov %s420_s7 }
  0x5d   : > { %s660_s7 = smov %s424_s8  ;;  %s661_s8 = smov %s483_s15 }
  0x5e   : > { %s662_s9 = smov %s471_s12  ;;  %16 = sbr.rel (!%p14_p8) target bundleno = 5 (0x5), region = 69 }
  0x63   :  { %214 = vsyncpa [#allocation3], 1 }
  0x64   :  { %216 = vsyncpa [#allocation3 + $0x1], 1 }
  0x65   :  { %217 = vsyncpa [#allocation4], 1 }
  0x66   :  { %219 = vsyncpa [#allocation4 + $0x1], 1 }

</bundles_post_ra>
